<compile_context>
chip_gen: v7x
topology: tpu7x:2x2x1
jax: 0.10.0
libtpu: 0.0.40
codegen_flags: <defaults>
</compile_context>

<pallas_src>
import math
from functools import partial

import jax
import jax.numpy as jnp
from jax.experimental import pallas as pl
from jax.experimental.pallas import tpu as pltpu


def _round_up(x, m):
    return ((x + m - 1) // m) * m


def _cdiv(a, b):
    return (a + b - 1) // b


def _sublane_multiple(dtype):
    # Sub-32-bit dtypes pack rows along sublanes: 8 (f32) / 16 (bf16) / 32 (int8/fp8).
    return max(8, 32 // jnp.dtype(dtype).itemsize)


def _budgets():
    """(physical VMEM, per-step HBM byte target, VMEM tile budget)."""
    try:
        vmem_cap = int(pltpu.get_tpu_info().vmem_capacity_bytes)
    except Exception:
        vmem_cap = 64 * 1024 * 1024  # conservative fallback (v7x-sized)
    # v7x (64 MiB VMEM, ~3.2 TB/s HBM) wants bigger per-step tiles than v5e/v6e.
    bytes_target = (8 << 20) if vmem_cap <= (64 << 20) else (4 << 20)
    tile_budget = min(vmem_cap // 2, 48 << 20)
    return vmem_cap, bytes_target, tile_budget


def _choose_block_rows(rows, per_row_hbm, per_row_vmem, sub, bytes_target, tile_budget):
    br = max(1, bytes_target // per_row_hbm)            # amortize ~0.35us/step overhead
    br = min(br, max(1, tile_budget // per_row_vmem))   # fit the pipeline in VMEM
    br = max(br, sub)
    # v7x: 2 TCs share the "parallel" grid axis -> keep >= 2 steps when splittable
    # (one extra step is noise on the 1-TC v5e/v6e parts).
    if rows >= 2 * sub:
        br = min(br, _round_up(_cdiv(rows, 2), sub))
    if br >= rows:
        return rows                                      # full-extent block: always legal
    return max(sub, (br // sub) * sub)


# ---------------------------------------------------------------------------
# Kernels
# ---------------------------------------------------------------------------
def _layernorm_kernel(x_ref, g_ref, o_ref, *, eps, inv_feats, stable):
    # x_ref: (block_rows, feats)   g_ref: (1, feats) f32   o_ref: (block_rows, feats)
    x = x_ref[...].astype(jnp.float32)

    if stable:
        # x = x / x.amax(dim=-1, keepdim=True)  (detach is a no-op in the forward)
        amax = jnp.max(x, axis=-1, keepdims=True)
        x = x * (1.0 / amax)                    # (br,1) divide only; exact

    # Centered two-pass statistics (tile is resident in VMEM -> free extra pass).
    mean = jnp.sum(x, axis=-1, keepdims=True) * inv_feats
    xc = x - mean
    var = jnp.sum(xc * xc, axis=-1, keepdims=True) * inv_feats   # unbiased=False
    inv = jax.lax.rsqrt(var + eps)
    o_ref[...] = (xc * inv * g_ref[...]).astype(o_ref.dtype)


def _layernorm_folded_kernel(x_ref, g_ref, seg_ref, segT_ref, o_ref, *, eps, inv_feats):
    # x_ref: (block_rows, k*D)  g_ref: (1, k*D)  seg: (k*D, k) 0/1  segT: (k, k*D)
    # Segmented mean/var over each D-wide lane segment via tiny MXU matmuls
    # (avoids in-kernel reshapes/relayouts; MXU is otherwise idle here).
    hi = jax.lax.Precision.HIGHEST
    x = x_ref[...].astype(jnp.float32)
    seg = seg_ref[...]
    segT = segT_ref[...]

    s1 = jnp.dot(x, seg, preferred_element_type=jnp.float32, precision=hi)       # (br, k)
    mean = s1 * inv_feats
    mean_b = jnp.dot(mean, segT, preferred_element_type=jnp.float32, precision=hi)
    xc = x - mean_b
    s2 = jnp.dot(xc * xc, seg, preferred_element_type=jnp.float32, precision=hi)
    inv = jax.lax.rsqrt(s2 * inv_feats + eps)                                     # (br, k)
    inv_b = jnp.dot(inv, segT, preferred_element_type=jnp.float32, precision=hi)
    o_ref[...] = (xc * inv_b * g_ref[...]).astype(o_ref.dtype)


# ---------------------------------------------------------------------------
# Wrapper
# ---------------------------------------------------------------------------
def layer_norm(x, g, *, stable=False, block_rows=None):
    """LayerNorm over the last axis, matching the PyTorch module with dim=-1."""
    orig_shape = x.shape
    feats = x.shape[-1]
    rows = math.prod(x.shape[:-1]) if x.ndim > 1 else 1

    # eps selection mirrors the PyTorch forward: 1e-5 for f32 else 1e-3.
    eps = 1e-5 if x.dtype == jnp.float32 else 1e-3

    itemsize = jnp.dtype(x.dtype).itemsize
    sub = _sublane_multiple(x.dtype)
    vmem_cap, bytes_target, tile_budget = _budgets()

    x2 = x.reshape(rows, feats)
    g2 = jnp.asarray(g, jnp.float32).reshape(1, feats)   # gamma stays f32, resident

    # Lane folding for small feature dims (stable path falls back: segmented max
    # has no cheap MXU form).
    k = (128 // feats) if (feats < 128 and 128 % feats == 0) else 1
    fold = (not stable) and k > 1 and rows % k == 0 and rows >= k

    if fold:
        lanes = k * feats                                  # == 128
        n_rows = rows // k
        x2 = x2.reshape(n_rows, lanes)                     # contiguous -> free reshape
        g2 = jnp.tile(g2, (1, k))                          # (1, 128)
        j = jnp.arange(lanes)
        seg = (j[:, None] // feats == jnp.arange(k)[None, :]).astype(jnp.float32)  # (128, k)
        segT = jnp.transpose(seg)                          # (k, 128), built host-side
        n_temps = 6                                        # f32 temporaries / element
    else:
        lanes = feats
        n_rows = rows
        n_temps = 5 if stable else 4

    # Per-row costs: HBM traffic (in + out) and live VMEM (double-buffered in+out
    # in x.dtype plus f32 kernel-body temporaries).
    per_row_hbm = lanes * 2 * itemsize
    per_row_vmem = lanes * (4 * itemsize + n_temps * 4)

    if block_rows is None:
        br = _choose_block_rows(n_rows, per_row_hbm, per_row_vmem, sub,
                                bytes_target, tile_budget)
    else:
        br = min(int(block_rows), n_rows)
        if br < n_rows:
            br = max(sub, (br // sub) * sub)

    grid = (pl.cdiv(n_rows, br),)

    # vmem_limit from the actual pipeline footprint (+ margin), not % of physical.
    footprint = br * per_row_vmem + (64 << 10)
    vmem_limit = int(min(max(footprint + (4 << 20), 16 << 20), int(vmem_cap * 0.9)))

    row_spec = pl.BlockSpec((br, lanes), lambda i: (i, 0))
    g_spec = pl.BlockSpec((1, lanes), lambda i: (0, 0))    # resident, no re-DMA
    cparams = pltpu.CompilerParams(
        dimension_semantics=("parallel",),
        vmem_limit_bytes=vmem_limit,
    )

    if fold:
        kernel = partial(_layernorm_folded_kernel, eps=eps, inv_feats=1.0 / feats)
        out = pl.pallas_call(
            kernel,
            out_shape=jax.ShapeDtypeStruct((n_rows, lanes), x.dtype),
            grid=grid,
            in_specs=[
                row_spec,
                g_spec,
                pl.BlockSpec((lanes, k), lambda i: (0, 0)),
                pl.BlockSpec((k, lanes), lambda i: (0, 0)),
            ],
            out_specs=row_spec,
            compiler_params=cparams,
        )(x2, g2, seg, segT)
        return out.reshape(rows, feats).reshape(orig_shape)

    kernel = partial(_layernorm_kernel, eps=eps, inv_feats=1.0 / feats, stable=stable)
    out = pl.pallas_call(
        kernel,
        out_shape=jax.ShapeDtypeStruct((n_rows, lanes), x.dtype),
        grid=grid,
        in_specs=[row_spec, g_spec],
        out_specs=row_spec,
        compiler_params=cparams,
    )(x2, g2)
    return out.reshape(orig_shape)


def layer_norm_ref(x, g, *, stable=False):
    """Pure-JAX reference mirroring the PyTorch forward (stats in f32, like the kernel)."""
    eps = 1e-5 if x.dtype == jnp.float32 else 1e-3
    xf = x.astype(jnp.float32)
    if stable:
        xf = xf / jnp.max(xf, axis=-1, keepdims=True)
    mean = jnp.mean(xf, axis=-1, keepdims=True)
    var = jnp.mean(jnp.square(xf - mean), axis=-1, keepdims=True)
    gf = jnp.asarray(g, jnp.float32).reshape((1,) * (x.ndim - 1) + (-1,))
    return ((xf - mean) * jax.lax.rsqrt(var + eps) * gf).astype(x.dtype)


if __name__ == "__main__":
    key = jax.random.PRNGKey(0)
    k1, k2, k3, k4, k5 = jax.random.split(key, 5)

    # 1) Primary: lane-dense hidden size (multiple of 128), shape as in the UNet
    #    attention blocks (B, N, D).
    B, N, D = 2, 64, 128
    x = jax.random.normal(k1, (B, N, D), dtype=jnp.float32)
    g = jnp.ones((D,), jnp.float32) + 0.1 * jax.random.normal(k2, (D,), jnp.float32)
    out = jax.block_until_ready(layer_norm(x, g))
    ref = layer_norm_ref(x, g)
    assert out.shape == x.shape and out.dtype == x.dtype
    assert jnp.allclose(out, ref, atol=1e-4, rtol=1e-4), "mismatch (D=128)"

    # 2) Small feature dim with rows NOT divisible by the fold factor (unfolded
    #    fallback) and rows not a block multiple (exercises partial boundary block).
    B2, N2, D2 = 2, 37, 32
    x2 = jax.random.normal(k3, (B2, N2, D2), dtype=jnp.float32)
    g2 = jnp.ones((D2,), jnp.float32) + 0.1 * jax.random.normal(k4, (D2,), jnp.float32)
    out2 = jax.block_until_ready(layer_norm(x2, g2))
    ref2 = layer_norm_ref(x2, g2)
    assert jnp.allclose(out2, ref2, atol=1e-4, rtol=1e-4), "mismatch (D=32, partial block)"

    # 3) Small feature dim hitting the lane-folded MXU path (rows % k == 0).
    B3, N3, D3 = 2, 8, 64
    x3 = jax.random.normal(k5, (B3, N3, D3), dtype=jnp.float32)
    g3 = jnp.ones((D3,), jnp.float32)
    out3 = jax.block_until_ready(layer_norm(x3, g3))
    ref3 = layer_norm_ref(x3, g3)
    assert jnp.allclose(out3, ref3, atol=1e-3, rtol=1e-3), "mismatch (folded D=64)"

    # 4) stable=True path (exact per-row reciprocal; positive activations as used).
    x4 = jnp.abs(x2) + 0.5
    out4 = jax.block_until_ready(layer_norm(x4, g2, stable=True))
    ref4 = layer_norm_ref(x4, g2, stable=True)
    assert jnp.allclose(out4, ref4, atol=1e-4, rtol=1e-4), "mismatch (stable)"

    # 5) bf16 input: exercises eps=1e-3 and the 16-row packed-sublane rounding.
    xb = x.astype(jnp.bfloat16)
    outb = jax.block_until_ready(layer_norm(xb, g))
    refb = layer_norm_ref(xb, g)
    assert outb.dtype == jnp.bfloat16
    assert jnp.allclose(outb.astype(jnp.float32), refb.astype(jnp.float32),
                        atol=5e-2, rtol=5e-2), "mismatch (bf16)"

    print("KERNEL_OK")
</pallas_src>

<mosaic_0001>
module attributes {stable_mosaic.version = 11 : i64} {
  func.func @_layernorm_kernel(%arg0: i32, %arg1: memref<64x128xf32, #tpu.memory_space<vmem>>, %arg2: memref<1x128xf32, #tpu.memory_space<vmem>>, %arg3: memref<64x128xf32, #tpu.memory_space<vmem>>) attributes {dimension_semantics = [#tpu.dimension_semantics<parallel>], iteration_bounds = array<i64: 2>, scalar_prefetch = 0 : i64, scratch_operands = 0 : i64, tpu.core_type = #tpu.core_type<tc>, window_params = [{transform_indices = @transform_0, window_bounds = array<i64: 64, 128>}, {pipeline_mode = #tpu.pipeline_mode<synchronous>, transform_indices = @transform_1, window_bounds = array<i64: 1, 128>}, {transform_indices = @transform_2, window_bounds = array<i64: 64, 128>}]} {
    %c0 = arith.constant 0 : index
    %c0_0 = arith.constant 0 : index
    %0 = vector.load %arg1[%c0, %c0_0] : memref<64x128xf32, #tpu.memory_space<vmem>>, vector<64x128xf32>
    %cst = arith.constant dense<0.000000e+00> : vector<64xf32>
    %1 = vector.multi_reduction <add>, %0, %cst [1] : vector<64x128xf32> to vector<64xf32>
    %2 = vector.shape_cast %1 : vector<64xf32> to vector<64x1xf32>
    %cst_1 = arith.constant 7.812500e-03 : f32
    %3 = vector.broadcast %cst_1 : f32 to vector<64x1xf32>
    %4 = arith.mulf %2, %3 : vector<64x1xf32>
    %5 = vector.broadcast %4 : vector<64x1xf32> to vector<64x128xf32>
    %6 = arith.subf %0, %5 : vector<64x128xf32>
    %7 = arith.mulf %6, %6 : vector<64x128xf32>
    %cst_2 = arith.constant dense<0.000000e+00> : vector<64xf32>
    %8 = vector.multi_reduction <add>, %7, %cst_2 [1] : vector<64x128xf32> to vector<64xf32>
    %9 = vector.shape_cast %8 : vector<64xf32> to vector<64x1xf32>
    %cst_3 = arith.constant 7.812500e-03 : f32
    %10 = vector.broadcast %cst_3 : f32 to vector<64x1xf32>
    %11 = arith.mulf %9, %10 : vector<64x1xf32>
    %cst_4 = arith.constant 9.99999974E-6 : f32
    %12 = vector.broadcast %cst_4 : f32 to vector<64x1xf32>
    %13 = arith.addf %11, %12 : vector<64x1xf32>
    %14 = math.rsqrt %13 : vector<64x1xf32>
    %15 = vector.broadcast %14 : vector<64x1xf32> to vector<64x128xf32>
    %16 = arith.mulf %6, %15 : vector<64x128xf32>
    %c0_5 = arith.constant 0 : index
    %c0_6 = arith.constant 0 : index
    %17 = vector.load %arg2[%c0_5, %c0_6] : memref<1x128xf32, #tpu.memory_space<vmem>>, vector<1x128xf32>
    %18 = vector.broadcast %17 : vector<1x128xf32> to vector<64x128xf32>
    %19 = arith.mulf %16, %18 : vector<64x128xf32>
    %c0_7 = arith.constant 0 : index
    %c0_8 = arith.constant 0 : index
    %20 = vector.load %arg3[%c0_7, %c0_8] : memref<64x128xf32, #tpu.memory_space<vmem>>, vector<64x128xf32>
    tpu.vector_store %arg3[%c0_7, %c0_8], %19 {strides = array<i32>} : memref<64x128xf32, #tpu.memory_space<vmem>>, vector<64x128xf32>,
    return
  }
  func.func @transform_0(%arg0: i32) -> (i32, i32) {
    %c0_i32 = arith.constant 0 : i32
    %c0_i32_0 = arith.constant 0 : i32
    return %arg0, %c0_i32 : i32, i32
  }
  func.func @transform_1(%arg0: i32) -> (i32, i32) {
    %c0_i32 = arith.constant 0 : i32
    %c0_i32_0 = arith.constant 0 : i32
    %c0_i32_1 = arith.constant 0 : i32
    return %c0_i32, %c0_i32_0 : i32, i32
  }
  func.func @transform_2(%arg0: i32) -> (i32, i32) {
    %c0_i32 = arith.constant 0 : i32
    %c0_i32_0 = arith.constant 0 : i32
    return %arg0, %c0_i32 : i32, i32
  }
}

</mosaic_0001>

<bundles_post_ra>
// kernel: tpu_custom_call.1
= control target key start
LH: loop header
LB: loop body
LE: loop exit
PB: predicated region body
PF: predicated region fallthrough
CT: control target
= control target key end

     0   :  { %7 = vsyncpa [#allocation3], 0  ;;  %s792_s0 = inlined_call_operand.hbm [shape: f32[128,128], index: 0, kind: input, shape index: {}]   ;;  %s793_s1 = inlined_call_operand.vmem [shape: f32[1,128], index: 1, kind: input, shape index: {}]   ;;  %s794_s2 = inlined_call_operand.hbm [shape: f32[128,128], index: 2, kind: output, shape index: {}]  }
   0x1   :  { %9 = vsyncpa [#allocation3 + $0x1], 0 }
   0x2   :  { %10 = vsyncpa [#allocation4], 0 }
   0x3   :  { %12 = vsyncpa [#allocation4 + $0x1], 0  ;;  %s572_s9 = smov 0   ;;  %s574_s10 = smov 0  }
   0x4   :  { %s576_s11 = smov 0   ;;  %s578_s12 = smov 0  }
   0x5 LB: > { %s593_s13 = sadd.s32 4294967295, %s549_s12   ;;  %s370_s14 = sadd.s32 4294967294, %s549_s12   ;;  %s549_s12 = sphi %s578_s12, %s807_s12   ;;  %s545_s11 = sphi %s576_s11, %s806_s11   ;;  %s541_s10 = sphi %s574_s10, %s805_s10   ;;  %s537_s9 = sphi %s572_s9, %s804_s9  }
   0x6   : > { %s597_s15 = sadd.s32 1, %s549_s12   ;;  %s25_s16 = sadd.s32 1, %s545_s11 }
   0x7   : > { %s22_s17 = ssub.s32 %s549_s12, %s597_s15  ;;  %p32_p0 = scmp.ne.s32.totalorder %s545_s11, %s541_s10 }
   0x8   : > { %p23_p1 = scmp.eq.s32.totalorder %s22_s17, 0  ;;  %p33_p2 = scmp.eq.s32.totalorder %s549_s12, 0 }
   0x9   : > { %p38_p3 = scmp.ne.s32.totalorder %s541_s10, %s537_s9  ;;  %p39_p4 = scmp.eq.s32.totalorder %s593_s13, 0 }
   0xa   : > { %s609_s18 = scalar_select %p23_p1, %s545_s11, %s25_s16  }
   0xb   : > { %p611_p5 = por %p33_p2, %p32_p0  ;;  %p615_p6 = por %p39_p4, %p38_p3 }
   0xc   : > { %p83_p7 = scmp.eq.s32.totalorder %s593_s13, 1  ;;  %p89_p8 = scmp.eq.s32.totalorder %s370_s14, 1 }
   0xd   : > { %p399_p10 = scmp.lt.s32.totalorder %s549_s12, 2  ;;  %s112_s23 = sand.u32 1, %s545_s11  }
   0xe   : > { %p622_p11 = por %p83_p7, %p32_p0  ;;  %p626_p12 = por %p89_p8, %p38_p3 }
   0xf   : > { %s385_s24 = sshll.u32 %s549_s12, 10  ;;  %s373_s25 = sshll.u32 %s112_s23, 6 }
  0x10   : > { %s798_s21 = scalar_select %p622_p11, 1, 0 }
  0x11   : > { %s799_s22 = scalar_select %p626_p12, 1, 0 }
  0x12   : > { %s635_s28 = scalar_lea.hbm %s792_s0, %s385_s24  ;;  %s116_s29 = scalar_lea.vmem [#allocation2], %s373_s25 }
  0x13   : > { %s123_s30 = sshll.u32 %s116_s29, 4  ;;  %p639_p13 = pnand %p399_p10, %p611_p5  ;;  %s643_s30 = int_to_ptr.vmem [resolvable:$true] %s123_s30 }
  0x14   : > { %s645_s4 = scalar_lea.sflag [#allocation3], %s112_s23  ;;  %s453_s5 = scalar_lea.hbm %s635_s28, 1024 }
  0x15   : > { %p454_p0 = scmp.ne.s32.totalorder %s635_s28, %s453_s5  ;;  %p455_p1 = pneg %p639_p13 }
  0x16   : > { %s458_s8 = scalar_lea.hbm %s792_s0, 2048  ;;  %p459_p4 = scmp.lt.u32.totalorder %s635_s28, %s792_s0 }
  0x17   : > { %p456_p2 = pnand %p455_p1, %p454_p0  ;;  %p460_p5 = scmp.lt.u32.totalorder %s458_s8, %s453_s5 }
  0x18   : > { %p462_p8 = scmp.lt.u32.totalorder %s453_s5, %s635_s28 }
  0x19   : > { %p457_p3 = pneg %p456_p2  ;;  %p461_p7 = por %p460_p5, %p459_p4 }
  0x1b   : > { %p463_p10 = por %p462_p8, %p461_p7 }
  0x1d   : > { %p464_p9 = pnand %p463_p10, %p457_p3 }
  0x1f   : > { %467 = shalt.err (!%p464_p9)
}
  0x20   : > { %s468_s17 = scalar_lea.vmem %s643_s30, 1024  ;;  %s551_s19 = smov [#allocation2]  }
  0x21   : > { %p469_p0 = scmp.ne.s32.totalorder %s643_s30, %s468_s17  ;;  %s473_s23 = sshll.u32 %s551_s19, 4  ;;  %s474_s23 = int_to_ptr.vmem [resolvable:$false] %s473_s23 }
  0x22   : > { %s475_s24 = scalar_lea.vmem %s474_s23, 2048  ;;  %p476_p11 = scmp.lt.s32.totalorder %s643_s30, %s474_s23 }
  0x23   : > { %p471_p2 = pnand %p469_p0, %p455_p1  ;;  %p477_p4 = scmp.lt.s32.totalorder %s475_s24, %s468_s17 }
  0x25   : > { %p472_p12 = pneg %p471_p2  ;;  %p478_p5 = por %p477_p4, %p476_p11 }
  0x27   : > { %p479_p7 = pnand %p478_p5, %p472_p12 }
  0x29   : > { %482 = shalt.err (!%p479_p7)
}
  0x2a   : > { %s552_s25 = smov 128   ;;  %s553_s26 = smov 8  }
  0x2b   : > { %394 = dma.hbm_to_vmem [thread:$0]  (!%p639_p13), %s635_s28, 1024, %s643_s30, %s645_s4, %s552_s25, %s552_s25, %s553_s26  }
  0x2c   : > { %p376_p9 = scmp.ge.s32.totalorder %s549_s12, 1  ;;  %p131_p1 = scmp.lt.s32.totalorder %s549_s12, 3 }
  0x2e   : > { %p132_p3 = pnand %p376_p9, %p131_p1 }
  0x2f   : > { %s676_s27 = sand.u32 (!%p132_p3), 1, %s541_s10  }
  0x30   : > { %135 = sbr.rel (%p132_p3) target bundleno = 397 (0x18d), region = 28  ;;  %s377_s29 = sshll.u32 (!%p132_p3), %s676_s27, 6 }
  0x31   : > { %s138_s5 = scalar_lea.sflag (!%p132_p3), [#allocation3], %s676_s27  ;;  %s141_s6 = scalar_lea.vmem (!%p132_p3), [#allocation2], %s377_s29 }
  0x37   : > { %528 = dma.done.wait (%p615_p6), %s138_s5, 1024  }
  0x38   : > { %530 = vsyncadd (%p615_p6), %s138_s5, 4294966272  ;;  %v164_v0 = vld [vmem:[%s141_s6] sm:$0xff]  ;;  %v166_v1 = vld [vmem:[%s141_s6 + $0x10] sm:$0xff]  ;;  %s724_s30 = scalar_lea.vmem [#allocation5], %s377_s29  ;;  %s386_s3 = sshll.u32 %s593_s13, 10 }
  0x39   : > { %172 = vadd.xlane.f32.xlu0 %v164_v0  ;;  %176 = vadd.xlane.f32.xlu1 %v166_v1  ;;  %v165_v2 = vld [vmem:[%s141_s6 + $0x8] sm:$0xff]  ;;  %v167_v3 = vld [vmem:[%s141_s6 + $0x18] sm:$0xff]  ;;  %v168_v4 = vld [vmem:[%s141_s6 + $0x20] sm:$0xff]  ;;  %s297_s4 = sshll.u32 %s724_s30, 4  ;;  %s745_s14 = scalar_lea.hbm %s794_s2, %s386_s3  ;;  %s747_s4 = int_to_ptr.vmem [resolvable:$true] %s297_s4 }
  0x3a   : > { %v169_v5 = vld [vmem:[%s141_s6 + $0x28] sm:$0xff]  ;;  %v170_v6 = vld [vmem:[%s141_s6 + $0x30] sm:$0xff]  ;;  %v171_v7 = vld [vmem:[%s141_s6 + $0x38] sm:$0xff]  ;;  %s284_s13 = scalar_lea.sflag [#allocation4], %s676_s27  ;;  %s483_s16 = scalar_lea.vmem %s747_s4, 1024 }
  0x3b   : > { %v379_v60 = vld [vmem:[%s793_s1] ss:$0 sm:$0xff]  ;;  %p484_p6 = scmp.ne.s32.totalorder %s747_s4, %s483_s16  ;;  %p801_p11 = scmp.ne.s32.totalorder %s798_s21, 0 }
  0x3c   : > { %s554_s17 = smov [#allocation5]  }
  0x3d   : > { %174 = vadd.xlane.f32.xlu0 %v165_v2  ;;  %178 = vadd.xlane.f32.xlu1 %v167_v3  ;;  %p485_p12 = pnand %p484_p6, %p801_p11  ;;  %s487_s19 = sshll.u32 %s554_s17, 4  ;;  %s488_s19 = int_to_ptr.vmem [resolvable:$false] %s487_s19 }
  0x3e   : > { %s489_s23 = scalar_lea.vmem %s488_s19, 2048  ;;  %p490_p8 = scmp.lt.s32.totalorder %s747_s4, %s488_s19 }
  0x3f   : > { %p486_p13 = pneg %p485_p12  ;;  %p491_p10 = scmp.lt.s32.totalorder %s489_s23, %s483_s16 }
  0x41   : > { %180 = vadd.xlane.f32.xlu0 %v168_v4  ;;  %182 = vadd.xlane.f32.xlu1 %v169_v5  ;;  %p492_p0 = por %p491_p10, %p490_p8 }
  0x43   : > { %p493_p2 = pnand %p492_p0, %p486_p13 }
  0x45   : > { %184 = vadd.xlane.f32.xlu0 %v170_v6  ;;  %186 = vadd.xlane.f32.xlu1 %v171_v7 }
  0xc6   : > { %v173_v8 = vpop.xlane.xlu0 %172  ;;  %v177_v9 = vpop.xlane.xlu1 %176 }
  0xc7   : > { %v188_v10 = vmul.f32 0.0078125, %v173_v8  ;;  %v190_v11 = vmul.f32 0.0078125, %v177_v9 }
  0xc9   : > { %v686_v12 = vsub.f32 %v164_v0, %v188_v10  ;;  %v688_v13 = vsub.f32 %v166_v1, %v190_v11 }
  0xca   : > { %v175_v14 = vpop.xlane.xlu0 %174  ;;  %v179_v15 = vpop.xlane.xlu1 %178 }
  0xcb   : > { %v189_v16 = vmul.f32 0.0078125, %v175_v14  ;;  %v204_v17 = vmul.f32 %v686_v12, %v686_v12  ;;  %v191_v18 = vmul.f32 0.0078125, %v179_v15  ;;  %v206_v21 = vmul.f32 %v688_v13, %v688_v13 }
  0xcd   : > { %v692_v19 = vsub.f32 %v165_v2, %v189_v16  ;;  %212 = vadd.xlane.f32.xlu0 %v204_v17  ;;  %v694_v20 = vsub.f32 %v167_v3, %v191_v18 }
  0xce   : > { %v181_v22 = vpop.xlane.xlu0 %180  ;;  %v183_v23 = vpop.xlane.xlu1 %182 }
  0xcf   : > { %v192_v24 = vmul.f32 0.0078125, %v181_v22  ;;  %v205_v25 = vmul.f32 %v692_v19, %v692_v19  ;;  %v193_v26 = vmul.f32 0.0078125, %v183_v23  ;;  %v207_v29 = vmul.f32 %v694_v20, %v694_v20 }
  0xd1   : > { %v700_v27 = vsub.f32 %v168_v4, %v192_v24  ;;  %216 = vadd.xlane.f32.xlu0 %v206_v21  ;;  %214 = vadd.xlane.f32.xlu1 %v205_v25  ;;  %v702_v28 = vsub.f32 %v169_v5, %v193_v26 }
  0xd2   : > { %v185_v30 = vpop.xlane.xlu0 %184  ;;  %v187_v31 = vpop.xlane.xlu1 %186 }
  0xd3   : > { %v194_v32 = vmul.f32 0.0078125, %v185_v30  ;;  %v208_v33 = vmul.f32 %v700_v27, %v700_v27  ;;  %v195_v34 = vmul.f32 0.0078125, %v187_v31  ;;  %v209_v37 = vmul.f32 %v702_v28, %v702_v28 }
  0xd5   : > { %v708_v35 = vsub.f32 %v170_v6, %v194_v32  ;;  %218 = vadd.xlane.f32.xlu1 %v207_v29  ;;  %220 = vadd.xlane.f32.xlu0 %v208_v33  ;;  %v710_v36 = vsub.f32 %v171_v7, %v195_v34 }
  0xd7   : > { %v210_v38 = vmul.f32 %v708_v35, %v708_v35  ;;  %v211_v39 = vmul.f32 %v710_v36, %v710_v36 }
  0xd9   : > { %222 = vadd.xlane.f32.xlu1 %v209_v37  ;;  %224 = vadd.xlane.f32.xlu0 %v210_v38 }
  0xdd   : > { %226 = vadd.xlane.f32.xlu1 %v211_v39 }
 0x15a   : > { %v213_v40 = vpop.xlane.xlu0 %212 }
 0x15b   : > { %v228_v41 = vmul.f32 0.0078125, %v213_v40 }
 0x15d   : > { %v236_v42 = vadd.f32 1e-05, %v228_v41 }
 0x15e   : > { %v215_v43 = vpop.xlane.xlu1 %214  ;;  %v217_v44 = vpop.xlane.xlu0 %216 }
 0x15f   : > { %437 = vrsqrt.f32 %v236_v42  ;;  %v229_v45 = vmul.f32 0.0078125, %v215_v43  ;;  %v230_v46 = vmul.f32 0.0078125, %v217_v44 }
 0x161   : > { %v237_v47 = vadd.f32 1e-05, %v229_v45  ;;  %v238_v48 = vadd.f32 1e-05, %v230_v46 }
 0x162   : > { %v219_v49 = vpop.xlane.xlu1 %218  ;;  %v221_v50 = vpop.xlane.xlu0 %220 }
 0x163   : > { %439 = vrsqrt.f32 %v237_v47  ;;  %v231_v51 = vmul.f32 0.0078125, %v219_v49  ;;  %v232_v52 = vmul.f32 0.0078125, %v221_v50 }
 0x164   : > { %441 = vrsqrt.f32 %v238_v48 }
 0x165   : > { %v239_v53 = vadd.f32 1e-05, %v231_v51  ;;  %v240_v54 = vadd.f32 1e-05, %v232_v52 }
 0x166   : > { %v223_v55 = vpop.xlane.xlu1 %222  ;;  %v225_v56 = vpop.xlane.xlu0 %224 }
 0x167   : > { %443 = vrsqrt.f32 %v239_v53  ;;  %v233_v57 = vmul.f32 0.0078125, %v223_v55  ;;  %v234_v58 = vmul.f32 0.0078125, %v225_v56 }
 0x168   : > { %445 = vrsqrt.f32 %v240_v54 }
 0x169   : > { %v438_v59 = vpop.eup %437  ;;  %v241_v61 = vadd.f32 1e-05, %v233_v57  ;;  %v242_v62 = vadd.f32 1e-05, %v234_v58 }
 0x16a   : > { %v252_v63 = vmul.f32 %v438_v59, %v686_v12  ;;  %v227_v0 = vpop.xlane.xlu1 %226 }
 0x16b   : > { %447 = vrsqrt.f32 %v241_v61  ;;  %v235_v1 = vmul.f32 0.0078125, %v227_v0 }
 0x16c   : > { %v267_v2 = vmul.f32 %v379_v60, %v252_v63  ;;  %449 = vrsqrt.f32 %v242_v62 }
 0x16d   : > { %v440_v3 = vpop.eup %439  ;;  %v243_v4 = vadd.f32 1e-05, %v235_v1 }
 0x16e   : > { %v442_v5 = vpop.eup %441  ;;  %275 = vst [vmem:[%s724_s30] sm:$0xff] %v267_v2  ;;  %v253_v6 = vmul.f32 %v440_v3, %v692_v19 }
 0x16f   : > { %v254_v7 = vmul.f32 %v442_v5, %v688_v13  ;;  %451 = vrsqrt.f32 %v243_v4 }
 0x170   : > { %v268_v8 = vmul.f32 %v379_v60, %v253_v6 }
 0x171   : > { %v444_v9 = vpop.eup %443  ;;  %v269_v10 = vmul.f32 %v379_v60, %v254_v7 }
 0x172   : > { %v446_v11 = vpop.eup %445  ;;  %276 = vst [vmem:[%s724_s30 + $0x8] sm:$0xff] %v268_v8  ;;  %v255_v12 = vmul.f32 %v444_v9, %v694_v20 }
 0x173   : > { %277 = vst [vmem:[%s724_s30 + $0x10] sm:$0xff] %v269_v10  ;;  %v256_v14 = vmul.f32 %v446_v11, %v700_v27 }
 0x174   : > { %v270_v15 = vmul.f32 %v379_v60, %v255_v12 }
 0x175   : > { %v448_v16 = vpop.eup %447  ;;  %v271_v17 = vmul.f32 %v379_v60, %v256_v14 }
 0x176   : > { %v450_v13 = vpop.eup %449  ;;  %278 = vst [vmem:[%s724_s30 + $0x18] sm:$0xff] %v270_v15  ;;  %v257_v18 = vmul.f32 %v448_v16, %v702_v28 }
 0x177   : > { %279 = vst [vmem:[%s724_s30 + $0x20] sm:$0xff] %v271_v17  ;;  %v258_v19 = vmul.f32 %v450_v13, %v708_v35 }
 0x178   : > { %v272_v21 = vmul.f32 %v379_v60, %v257_v18 }
 0x179   : > { %v452_v20 = vpop.eup %451  ;;  %v273_v22 = vmul.f32 %v379_v60, %v258_v19 }
 0x17a   : > { %280 = vst [vmem:[%s724_s30 + $0x28] sm:$0xff] %v272_v21  ;;  %v259_v23 = vmul.f32 %v452_v20, %v710_v36 }
 0x17b   : > { %281 = vst [vmem:[%s724_s30 + $0x30] sm:$0xff] %v273_v22 }
 0x17c   : > { %v274_v24 = vmul.f32 %v379_v60, %v259_v23 }
 0x17e   : > { %282 = vst [vmem:[%s724_s30 + $0x38] sm:$0xff] %v274_v24 }
 0x17f   : > { %496 = shalt.err (!%p493_p2)
}
 0x180   : > { %s497_s24 = scalar_lea.hbm %s745_s14, 1024  ;;  %s501_s29 = scalar_lea.hbm %s794_s2, 2048 }
 0x181   : > { %p498_p4 = scmp.ne.s32.totalorder %s745_s14, %s497_s24  ;;  %p502_p9 = scmp.lt.u32.totalorder %s745_s14, %s794_s2 }
 0x182   : > { %p503_p1 = scmp.lt.u32.totalorder %s501_s29, %s497_s24  ;;  %p505_p6 = scmp.lt.u32.totalorder %s497_s24, %s745_s14 }
 0x183   : > { %p499_p5 = pnand %p498_p4, %p801_p11 }
 0x184   : > { %p504_p3 = por %p503_p1, %p502_p9 }
 0x185   : > { %p500_p7 = pneg %p499_p5 }
 0x186   : > { %p506_p12 = por %p505_p6, %p504_p3 }
 0x188   : > { %p507_p13 = pnand %p506_p12, %p500_p7 }
 0x18a   : > { %510 = shalt.err (!%p507_p13)
}
 0x18b   : > { %s555_s20 = smov 128   ;;  %s556_s28 = smov 8  }
 0x18c   : > { %389 = dma.vmem_to_hbm [thread:$0]  (%p801_p11), %s747_s4, 1024, %s745_s14, %s284_s13, %s555_s20, %s555_s20, %s556_s28  }
 0x18d PF: > { %s312_s30 = sand.u32 1, %s537_s9   ;;  %p802_p8 = scmp.ne.s32.totalorder %s799_s22, 0 }
 0x18e   : > { %p803_p10 = scmp.ge.s32.totalorder %s549_s12, 2  ;;  %s313_s3 = scalar_lea.sflag [#allocation4], %s312_s30 }
 0x190   : > { %p396_p0 = pnand %p803_p10, %p802_p8 }
 0x192   : > { %532 = dma.done.wait (!%p396_p0), %s313_s3, 1024  }
 0x193   : > { %534 = vsyncadd (!%p396_p0), %s313_s3, 4294966272  ;;  %p15_p2 = scmp.ge.s32.totalorder %s597_s15, 4   ;;  %s804_s9 = smov %s541_s10 }
 0x194   : > { %s805_s10 = smov %s545_s11  ;;  %s806_s11 = smov %s609_s18 }
 0x195   : > { %s807_s12 = smov %s597_s15  ;;  %17 = sbr.rel (!%p15_p2) target bundleno = 5 (0x5), region = 73 }
 0x19c   :  { %318 = vsyncpa [#allocation3], 1 }
 0x19d   :  { %320 = vsyncpa [#allocation3 + $0x1], 1 }
 0x19e   :  { %321 = vsyncpa [#allocation4], 1 }
 0x19f   :  { %323 = vsyncpa [#allocation4 + $0x1], 1 }

</bundles_post_ra>
